<compile_context>
chip_gen: v7x
topology: tpu7x:2x2x1
jax: 0.10.0
libtpu: 0.0.40
codegen_flags: <defaults>
</compile_context>

<pallas_src>
import jax
import jax.numpy as jnp
from jax.experimental import pallas as pl
from jax.experimental.pallas import tpu as pltpu

HIDDEN = 100      # fixed by the module (fc1 out features)
LANE = 128        # TPU lane width
SUBLANE = 8       # TPU sublane width

# Conservative activation budget: safe under v5e's 16 MiB default scoped VMEM,
# leaves headroom on v6e (32 MiB default) and v7x (32 MiB default / 64 MiB phys).
_VMEM_BUDGET_BYTES = 12 * 1024 * 1024
_TB_CAP = 2048    # beyond this, per-step overhead is already fully amortized


def _round_up(n, m):
    return ((n + m - 1) // m) * m


def _cdiv(a, b):
    return -(-a // b)


def _siamese_kernel(x1_ref, x2_ref, w1_ref, b1_ref, w2_ref, b2_ref, o1_ref, o2_ref):
    # One batch tile of BOTH branches per grid step; weights/biases are the same
    # VMEM-resident block for every step.  Hidden dim is lane-padded (128); the
    # output minor dim is the true latent_dim (less writeback > dense vst here).
    w1 = w1_ref[...]                                           # (D,  Hp)
    b1 = b1_ref[...]                                           # (1,  Hp)
    w2 = w2_ref[...]                                           # (Hp, L)
    b2 = b2_ref[...]                                           # (1,  L)

    def branch(x):
        h = jnp.dot(x, w1, preferred_element_type=jnp.float32) + b1
        h = jnp.maximum(h, 0.0)                                # ReLU (f32 VPU)
        return jnp.dot(h, w2, preferred_element_type=jnp.float32) + b2

    o1_ref[...] = branch(x1_ref[...]).astype(o1_ref.dtype)
    o2_ref[...] = branch(x2_ref[...]).astype(o2_ref.dtype)


@jax.jit
def _fused_forward(x1, x2, w1, b1, w2, b2):
    B, D = x1.shape
    H = w1.shape[1]                    # 100
    L = w2.shape[1]                    # latent_dim
    Hp = _round_up(H, LANE)            # 128 (lane-aligned hidden / contraction dim)

    # --- batch tile selection (balanced tiles, VMEM-budgeted) -------------------
    # Double-buffered bytes: weights ~ 2*4*(D*Hp + Hp*L + Hp + L);
    # activations per row (x1,x2,o1,o2) ~ 2*4*(2D + 2L) = 16*(D+L).
    weight_bytes = 2 * 4 * (D * Hp + Hp * L + Hp + L)
    per_row_bytes = 16 * (D + L)
    tb_cap = max(SUBLANE, (_VMEM_BUDGET_BYTES - weight_bytes) // per_row_bytes)
    tb_cap = min(tb_cap, _TB_CAP)
    tb_cap = max(SUBLANE, (tb_cap // SUBLANE) * SUBLANE)

    num_tiles = _cdiv(B, tb_cap)
    if num_tiles == 1 and B >= 2 * SUBLANE:
        num_tiles = 2                  # let v7x's two TensorCores both work
    TB = _round_up(_cdiv(B, num_tiles), SUBLANE)
    grid_n = _cdiv(B, TB)
    Bp = grid_n * TB                   # tail padding <= TB-1 rows (usually <= 7)

    if Bp != B:
        x1 = jnp.pad(x1, ((0, Bp - B), (0, 0)))
        x2 = jnp.pad(x2, ((0, Bp - B), (0, 0)))

    # --- zero-pad params on the hidden dim only (exact: zeros don't change sums) -
    w1p = jnp.pad(w1, ((0, 0), (0, Hp - H)))                  # (D, Hp)
    b1p = jnp.pad(b1.reshape(1, H), ((0, 0), (0, Hp - H)))    # (1, Hp)
    w2p = jnp.pad(w2, ((0, Hp - H), (0, 0)))                  # (Hp, L)
    b2p = b2.reshape(1, L)                                    # (1, L)

    vmem = pltpu.MemorySpace.VMEM
    out1, out2 = pl.pallas_call(
        _siamese_kernel,
        out_shape=(jax.ShapeDtypeStruct((Bp, L), jnp.float32),
                   jax.ShapeDtypeStruct((Bp, L), jnp.float32)),
        grid=(grid_n,),
        in_specs=[
            pl.BlockSpec((TB, D), lambda i: (i, 0), memory_space=vmem),   # x1 tile
            pl.BlockSpec((TB, D), lambda i: (i, 0), memory_space=vmem),   # x2 tile
            pl.BlockSpec((D, Hp), lambda i: (0, 0), memory_space=vmem),   # w1 (resident)
            pl.BlockSpec((1, Hp), lambda i: (0, 0), memory_space=vmem),   # b1
            pl.BlockSpec((Hp, L), lambda i: (0, 0), memory_space=vmem),   # w2 (resident)
            pl.BlockSpec((1, L), lambda i: (0, 0), memory_space=vmem),    # b2
        ],
        out_specs=(
            pl.BlockSpec((TB, L), lambda i: (i, 0), memory_space=vmem),   # out1 tile
            pl.BlockSpec((TB, L), lambda i: (i, 0), memory_space=vmem),   # out2 tile
        ),
        compiler_params=pltpu.CompilerParams(
            dimension_semantics=("parallel",)),
    )(x1, x2, w1p, b1p, w2p, b2p)

    if Bp != B:
        out1 = out1[:B]
        out2 = out2[:B]
    return out1, out2


def siamese_forward(x1, x2, params):
    """forward(x1, x2) -> (out1, out2), exactly like the PyTorch module."""
    w1, b1, w2, b2 = params
    return _fused_forward(x1, x2, w1, b1, w2, b2)


def init_params(input_size, latent_dim, seed=53):
    """Deterministic init mimicking torch.nn.Linear's U(-1/sqrt(fan_in), 1/sqrt(fan_in)).
    Weights stored as (in, out) so the kernel computes x @ W + b  (== x @ W_pt.T + b)."""
    key = jax.random.PRNGKey(seed)
    k1, k2, k3, k4 = jax.random.split(key, 4)
    lim1 = 1.0 / jnp.sqrt(jnp.float32(input_size))
    lim2 = 1.0 / jnp.sqrt(jnp.float32(HIDDEN))
    w1 = jax.random.uniform(k1, (input_size, HIDDEN), jnp.float32, -lim1, lim1)
    b1 = jax.random.uniform(k2, (HIDDEN,), jnp.float32, -lim1, lim1)
    w2 = jax.random.uniform(k3, (HIDDEN, latent_dim), jnp.float32, -lim2, lim2)
    b2 = jax.random.uniform(k4, (latent_dim,), jnp.float32, -lim2, lim2)
    return w1, b1, w2, b2


if __name__ == "__main__":
    input_size = 32
    latent_dim = 16
    batch = 8

    params = init_params(input_size, latent_dim, seed=53)

    key = jax.random.PRNGKey(0)
    kx1, kx2 = jax.random.split(key)
    x1 = jax.random.normal(kx1, (batch, input_size), jnp.float32)
    x2 = jax.random.normal(kx2, (batch, input_size), jnp.float32)

    out1, out2 = siamese_forward(x1, x2, params)
    jax.block_until_ready(out1)
    jax.block_until_ready(out2)

    # sanity: shapes and pure-JAX reference agree
    w1, b1, w2, b2 = params
    ref1 = jnp.maximum(x1 @ w1 + b1, 0.0) @ w2 + b2
    ref2 = jnp.maximum(x2 @ w1 + b1, 0.0) @ w2 + b2
    assert out1.shape == (batch, latent_dim) and out2.shape == (batch, latent_dim)
    assert jnp.allclose(out1, ref1, atol=1e-5)
    assert jnp.allclose(out2, ref2, atol=1e-5)

    print("KERNEL_OK")
</pallas_src>

<mosaic_0001>
module attributes {stable_mosaic.version = 11 : i64} {
  func.func @_siamese_kernel(%arg0: i32, %arg1: memref<8x32xf32, #tpu.memory_space<vmem>>, %arg2: memref<8x32xf32, #tpu.memory_space<vmem>>, %arg3: memref<32x128xf32, #tpu.memory_space<vmem>>, %arg4: memref<1x128xf32, #tpu.memory_space<vmem>>, %arg5: memref<128x16xf32, #tpu.memory_space<vmem>>, %arg6: memref<1x16xf32, #tpu.memory_space<vmem>>, %arg7: memref<8x16xf32, #tpu.memory_space<vmem>>, %arg8: memref<8x16xf32, #tpu.memory_space<vmem>>) attributes {dimension_semantics = [#tpu.dimension_semantics<parallel>], iteration_bounds = array<i64: 1>, scalar_prefetch = 0 : i64, scratch_operands = 0 : i64, tpu.core_type = #tpu.core_type<tc>, window_params = [{transform_indices = @transform_0, window_bounds = array<i64: 8, 32>}, {transform_indices = @transform_1, window_bounds = array<i64: 8, 32>}, {pipeline_mode = #tpu.pipeline_mode<synchronous>, transform_indices = @transform_2, window_bounds = array<i64: 32, 128>}, {pipeline_mode = #tpu.pipeline_mode<synchronous>, transform_indices = @transform_3, window_bounds = array<i64: 1, 128>}, {pipeline_mode = #tpu.pipeline_mode<synchronous>, transform_indices = @transform_4, window_bounds = array<i64: 128, 16>}, {pipeline_mode = #tpu.pipeline_mode<synchronous>, transform_indices = @transform_5, window_bounds = array<i64: 1, 16>}, {transform_indices = @transform_6, window_bounds = array<i64: 8, 16>}, {transform_indices = @transform_7, window_bounds = array<i64: 8, 16>}]} {
    %c0 = arith.constant 0 : index
    %c0_0 = arith.constant 0 : index
    %0 = vector.load %arg3[%c0, %c0_0] : memref<32x128xf32, #tpu.memory_space<vmem>>, vector<32x128xf32>
    %c0_1 = arith.constant 0 : index
    %c0_2 = arith.constant 0 : index
    %1 = vector.load %arg4[%c0_1, %c0_2] : memref<1x128xf32, #tpu.memory_space<vmem>>, vector<1x128xf32>
    %c0_3 = arith.constant 0 : index
    %c0_4 = arith.constant 0 : index
    %2 = vector.load %arg5[%c0_3, %c0_4] : memref<128x16xf32, #tpu.memory_space<vmem>>, vector<128x16xf32>
    %c0_5 = arith.constant 0 : index
    %c0_6 = arith.constant 0 : index
    %3 = vector.load %arg6[%c0_5, %c0_6] : memref<1x16xf32, #tpu.memory_space<vmem>>, vector<1x16xf32>
    %c0_7 = arith.constant 0 : index
    %c0_8 = arith.constant 0 : index
    %4 = vector.load %arg1[%c0_7, %c0_8] : memref<8x32xf32, #tpu.memory_space<vmem>>, vector<8x32xf32>
    %cst = arith.constant dense<0.000000e+00> : vector<8x128xf32>
    %5 = tpu.matmul %4, %0, %cst {dimension_numbers = #tpu.dot_dimension_numbers<[1], [0], [0], [1], [0, 0, 1, 1], [], []>} : vector<8x32xf32>, vector<32x128xf32>, vector<8x128xf32> -> vector<8x128xf32>
    %6 = vector.broadcast %1 : vector<1x128xf32> to vector<8x128xf32>
    %7 = arith.addf %5, %6 : vector<8x128xf32>
    %cst_9 = arith.constant 0.000000e+00 : f32
    %8 = vector.broadcast %cst_9 : f32 to vector<8x128xf32>
    %9 = arith.maximumf %7, %8 : vector<8x128xf32>
    %cst_10 = arith.constant dense<0.000000e+00> : vector<8x16xf32>
    %10 = tpu.matmul %9, %2, %cst_10 {dimension_numbers = #tpu.dot_dimension_numbers<[1], [0], [0], [1], [0, 0, 1, 1], [], []>} : vector<8x128xf32>, vector<128x16xf32>, vector<8x16xf32> -> vector<8x16xf32>
    %11 = vector.broadcast %3 : vector<1x16xf32> to vector<8x16xf32>
    %12 = arith.addf %10, %11 : vector<8x16xf32>
    %c0_11 = arith.constant 0 : index
    %c0_12 = arith.constant 0 : index
    %13 = vector.load %arg7[%c0_11, %c0_12] : memref<8x16xf32, #tpu.memory_space<vmem>>, vector<8x16xf32>
    tpu.vector_store %arg7[%c0_11, %c0_12], %12 {strides = array<i32>} : memref<8x16xf32, #tpu.memory_space<vmem>>, vector<8x16xf32>,
    %c0_13 = arith.constant 0 : index
    %c0_14 = arith.constant 0 : index
    %14 = vector.load %arg2[%c0_13, %c0_14] : memref<8x32xf32, #tpu.memory_space<vmem>>, vector<8x32xf32>
    %cst_15 = arith.constant dense<0.000000e+00> : vector<8x128xf32>
    %15 = tpu.matmul %14, %0, %cst_15 {dimension_numbers = #tpu.dot_dimension_numbers<[1], [0], [0], [1], [0, 0, 1, 1], [], []>} : vector<8x32xf32>, vector<32x128xf32>, vector<8x128xf32> -> vector<8x128xf32>
    %16 = vector.broadcast %1 : vector<1x128xf32> to vector<8x128xf32>
    %17 = arith.addf %15, %16 : vector<8x128xf32>
    %cst_16 = arith.constant 0.000000e+00 : f32
    %18 = vector.broadcast %cst_16 : f32 to vector<8x128xf32>
    %19 = arith.maximumf %17, %18 : vector<8x128xf32>
    %cst_17 = arith.constant dense<0.000000e+00> : vector<8x16xf32>
    %20 = tpu.matmul %19, %2, %cst_17 {dimension_numbers = #tpu.dot_dimension_numbers<[1], [0], [0], [1], [0, 0, 1, 1], [], []>} : vector<8x128xf32>, vector<128x16xf32>, vector<8x16xf32> -> vector<8x16xf32>
    %21 = vector.broadcast %3 : vector<1x16xf32> to vector<8x16xf32>
    %22 = arith.addf %20, %21 : vector<8x16xf32>
    %c0_18 = arith.constant 0 : index
    %c0_19 = arith.constant 0 : index
    %23 = vector.load %arg8[%c0_18, %c0_19] : memref<8x16xf32, #tpu.memory_space<vmem>>, vector<8x16xf32>
    tpu.vector_store %arg8[%c0_18, %c0_19], %22 {strides = array<i32>} : memref<8x16xf32, #tpu.memory_space<vmem>>, vector<8x16xf32>,
    return
  }
  func.func @transform_0(%arg0: i32) -> (i32, i32) {
    %c0_i32 = arith.constant 0 : i32
    %c0_i32_0 = arith.constant 0 : i32
    return %arg0, %c0_i32 : i32, i32
  }
  func.func @transform_1(%arg0: i32) -> (i32, i32) {
    %c0_i32 = arith.constant 0 : i32
    %c0_i32_0 = arith.constant 0 : i32
    return %arg0, %c0_i32 : i32, i32
  }
  func.func @transform_2(%arg0: i32) -> (i32, i32) {
    %c0_i32 = arith.constant 0 : i32
    %c0_i32_0 = arith.constant 0 : i32
    %c0_i32_1 = arith.constant 0 : i32
    return %c0_i32, %c0_i32_0 : i32, i32
  }
  func.func @transform_3(%arg0: i32) -> (i32, i32) {
    %c0_i32 = arith.constant 0 : i32
    %c0_i32_0 = arith.constant 0 : i32
    %c0_i32_1 = arith.constant 0 : i32
    return %c0_i32, %c0_i32_0 : i32, i32
  }
  func.func @transform_4(%arg0: i32) -> (i32, i32) {
    %c0_i32 = arith.constant 0 : i32
    %c0_i32_0 = arith.constant 0 : i32
    %c0_i32_1 = arith.constant 0 : i32
    return %c0_i32, %c0_i32_0 : i32, i32
  }
  func.func @transform_5(%arg0: i32) -> (i32, i32) {
    %c0_i32 = arith.constant 0 : i32
    %c0_i32_0 = arith.constant 0 : i32
    %c0_i32_1 = arith.constant 0 : i32
    return %c0_i32, %c0_i32_0 : i32, i32
  }
  func.func @transform_6(%arg0: i32) -> (i32, i32) {
    %c0_i32 = arith.constant 0 : i32
    %c0_i32_0 = arith.constant 0 : i32
    return %arg0, %c0_i32 : i32, i32
  }
  func.func @transform_7(%arg0: i32) -> (i32, i32) {
    %c0_i32 = arith.constant 0 : i32
    %c0_i32_0 = arith.constant 0 : i32
    return %arg0, %c0_i32 : i32, i32
  }
}

</mosaic_0001>

<bundles_post_ra>
// kernel: _fused_forward.1
= control target key start
LH: loop header
LB: loop body
LE: loop exit
PB: predicated region body
PF: predicated region fallthrough
CT: control target
= control target key end

     0   :  { %13 = vsyncpa [#allocation3], 0  ;;  %v636_v3 = vmov 0.0|0.0   ;;  %vm637_vm0 = vmmov 0   ;;  %v638_v6 = vmov 0.0   ;;  %vm56_vm1 = vcmask 261120   ;;  %s801_s0 = inlined_call_operand.vmem [shape: f32[8,32], index: 0, kind: input, shape index: {}]   ;;  %s802_s1 = inlined_call_operand.vmem [shape: f32[8,32], index: 1, kind: input, shape index: {}]   ;;  %s803_s2 = inlined_call_operand.vmem [shape: f32[32,128], index: 2, kind: input, shape index: {}]   ;;  %s804_s3 = inlined_call_operand.vmem [shape: f32[1,128], index: 3, kind: input, shape index: {}]   ;;  %s805_s4 = inlined_call_operand.vmem [shape: f32[128,16], index: 4, kind: input, shape index: {}]   ;;  %s806_s5 = inlined_call_operand.vmem [shape: f32[1,16], index: 5, kind: input, shape index: {}]   ;;  %s807_s6 = inlined_call_operand.hbm [shape: f32[8,16], index: 6, kind: output, shape index: {0}]   ;;  %s808_s7 = inlined_call_operand.hbm [shape: f32[8,16], index: 7, kind: output, shape index: {1}]  }
   0x1   :  { %v27_v0 = vld [vmem:[%s803_s2] sm:$0xff]  ;;  %v28_v1 = vld [vmem:[%s803_s2 + $0x8] sm:$0xff]  ;;  %v29_v2 = vld [vmem:[%s803_s2 + $0x10] sm:$0xff]  ;;  %523 = vmatprep.subr.bf16.mxu1 %v636_v3  ;;  %553 = vmatprep.subr.bf16.mxu0 %v636_v3 }
   0x2   :  { %v524_v4 = vpack.c.bf16 %v28_v1, %v27_v0  ;;  %v30_v5 = vld [vmem:[%s803_s2 + $0x18] sm:$0xff]  ;;  %439 = vmatprep.mubr.msk.f32.mxu1 %vm637_vm0, %v638_v6  ;;  %485 = vmatprep.mubr.msk.f32.mxu0 %vm637_vm0, %v638_v6  ;;  %v32_v8 = vld [vmem:[%s805_s4] sm:$0xff]  ;;  %v33_v9 = vld [vmem:[%s805_s4 + $0x8] sm:$0xff] }
   0x3   :  { %v527_v7 = vpack.c.bf16 %v30_v5, %v29_v2  ;;  %v49_v10 = vld [vmem:[%s801_s0] sm:$0xff]  ;;  %v530_v12 = vpack.c.bf16 %v33_v9, %v32_v8 }
   0x4   :  { %525 = vmatpush3.bf16.msra.mxu1 %v524_v4  ;;  %555 = vmatpush3.bf16.msra.mxu0 %v524_v4  ;;  %v209_v11 = vld [vmem:[%s802_s1] sm:$0xff] }
   0x5   :  { %526 = vmatprep.subr.bf16.mxu1 %v636_v3  ;;  %556 = vmatprep.subr.bf16.mxu0 %v636_v3 }
   0x8   :  { %528 = vmatpush3.bf16.msra.mxu1 %v527_v7  ;;  %558 = vmatpush3.bf16.msra.mxu0 %v527_v7 }
   0x9   :  { %14 = vsyncpa [#allocation5], 0  ;;  %529 = vmatprep.subr.bf16.mxu1 %v636_v3  ;;  %559 = vmatprep.subr.bf16.mxu0 %v636_v3  ;;  %v34_v13 = vld [vmem:[%s805_s4 + $0x10] sm:$0xff]  ;;  %v35_v14 = vld [vmem:[%s805_s4 + $0x18] sm:$0xff]  ;;  %s640_s21 = smov [#allocation4]   ;;  %vm207_vm2 = vcmask 130048  }
   0xa   :  { %v533_v15 = vpack.c.bf16 %v35_v14, %v34_v13  ;;  %v36_v16 = vld [vmem:[%s805_s4 + $0x20] sm:$0xff]  ;;  %v37_v17 = vld [vmem:[%s805_s4 + $0x28] sm:$0xff]  ;;  %v38_v19 = vld [vmem:[%s805_s4 + $0x30] sm:$0xff]  ;;  %s371_s22 = sshll.u32 %s640_s21, 4  ;;  %s372_s22 = int_to_ptr.vmem [resolvable:$true] %s371_s22 }
   0xb   :  { %440 = vmatmul.mubr.msk.f32.vlgmr.msra.gmra.mrb[0].mxu1 %vm56_vm1, %v49_v10  ;;  %486 = vmatmul.mubr.msk.f32.vlgmr.msra.gmra.mrb[0].mxu0 %vm56_vm1, %v209_v11  ;;  %v536_v18 = vpack.c.bf16 %v37_v17, %v36_v16  ;;  %v39_v20 = vld [vmem:[%s805_s4 + $0x38] sm:$0xff]  ;;  %v40_v22 = vld [vmem:[%s805_s4 + $0x40] sm:$0xff]  ;;  %v41_v23 = vld [vmem:[%s805_s4 + $0x48] sm:$0xff] }
   0xc   :  { %531 = vmatpush3.bf16.msra.mxu1 %v530_v12  ;;  %561 = vmatpush3.bf16.msra.mxu0 %v530_v12  ;;  %v539_v21 = vpack.c.bf16 %v39_v20, %v38_v19  ;;  %v542_v24 = vpack.c.bf16 %v41_v23, %v40_v22  ;;  %v42_v25 = vld [vmem:[%s805_s4 + $0x50] sm:$0xff]  ;;  %v43_v26 = vld [vmem:[%s805_s4 + $0x58] sm:$0xff]  ;;  %v44_v28 = vld [vmem:[%s805_s4 + $0x60] sm:$0xff] }
   0xd   :  { %532 = vmatprep.subr.bf16.mxu1 %v636_v3  ;;  %562 = vmatprep.subr.bf16.mxu0 %v636_v3  ;;  %v545_v27 = vpack.c.bf16 %v43_v26, %v42_v25  ;;  %v45_v29 = vld [vmem:[%s805_s4 + $0x68] sm:$0xff]  ;;  %v46_v31 = vld [vmem:[%s805_s4 + $0x70] sm:$0xff]  ;;  %v47_v32 = vld [vmem:[%s805_s4 + $0x78] sm:$0xff]  ;;  %s639_s4 = smov [#allocation2]  }
   0xe   :  { %474 = vmatprep.mubr.msk.f32.mxu1 %vm637_vm0, %v638_v6  ;;  %520 = vmatprep.mubr.msk.f32.mxu0 %vm637_vm0, %v638_v6  ;;  %v548_v30 = vpack.c.bf16 %v45_v29, %v44_v28  ;;  %v551_v33 = vpack.c.bf16 %v47_v32, %v46_v31  ;;  %v383_v34 = vld [vmem:[%s804_s3] ss:$0 sm:$0xff]  ;;  %s361_s20 = sshll.u32 %s639_s4, 4  ;;  %s362_s20 = int_to_ptr.vmem [resolvable:$true] %s361_s20 }
   0xf   :  { %v385_v43 = vld [vmem:[%s806_s5] ss:$0 sm:$0xff]  ;;  %s588_s3 = scalar_lea.vmem %s362_s20, 128  ;;  %p593_p1 = scmp.lt.s32.totalorder %s362_s20, %s362_s20 }
  0x10   :  { %534 = vmatpush3.bf16.msra.mxu1 %v533_v15  ;;  %564 = vmatpush3.bf16.msra.mxu0 %v533_v15  ;;  %p589_p0 = scmp.ne.s32.totalorder %s362_s20, %s588_s3  ;;  %p594_p2 = scmp.lt.s32.totalorder %s588_s3, %s588_s3 }
  0x11   :  { %535 = vmatprep.subr.bf16.mxu1 %v636_v3  ;;  %565 = vmatprep.subr.bf16.mxu0 %v636_v3 }
  0x12   :  { %p595_p3 = por %p594_p2, %p593_p1 }
  0x14   :  { %537 = vmatpush3.bf16.msra.mxu1 %v536_v18  ;;  %567 = vmatpush3.bf16.msra.mxu0 %v536_v18  ;;  %p596_p4 = pnand %p595_p3, %p589_p0 }
  0x15   :  { %538 = vmatprep.subr.bf16.mxu1 %v636_v3  ;;  %568 = vmatprep.subr.bf16.mxu0 %v636_v3 }
  0x18   :  { %540 = vmatpush3.bf16.msra.mxu1 %v539_v21  ;;  %570 = vmatpush3.bf16.msra.mxu0 %v539_v21 }
  0x19   :  { %541 = vmatprep.subr.bf16.mxu1 %v636_v3  ;;  %571 = vmatprep.subr.bf16.mxu0 %v636_v3 }
  0x1c   :  { %543 = vmatpush3.bf16.msra.mxu1 %v542_v24  ;;  %573 = vmatpush3.bf16.msra.mxu0 %v542_v24 }
  0x1d   :  { %544 = vmatprep.subr.bf16.mxu1 %v636_v3  ;;  %574 = vmatprep.subr.bf16.mxu0 %v636_v3 }
  0x20   :  { %546 = vmatpush3.bf16.msra.mxu1 %v545_v27  ;;  %576 = vmatpush3.bf16.msra.mxu0 %v545_v27 }
  0x21   :  { %547 = vmatprep.subr.bf16.mxu1 %v636_v3  ;;  %577 = vmatprep.subr.bf16.mxu0 %v636_v3 }
  0x24   :  { %549 = vmatpush3.bf16.msra.mxu1 %v548_v30  ;;  %579 = vmatpush3.bf16.msra.mxu0 %v548_v30 }
  0x25   :  { %550 = vmatprep.subr.bf16.mxu1 %v636_v3  ;;  %580 = vmatprep.subr.bf16.mxu0 %v636_v3 }
  0x28   :  { %552 = vmatpush3.bf16.msra.mxu1 %v551_v33  ;;  %582 = vmatpush3.bf16.msra.mxu0 %v551_v33 }
  0xde   :  { %v126_v35 = vpop.f32.mrb[0].mxu1  ;;  %v279_v36 = vpop.f32.mrb[0].mxu0 }
  0xdf   :  { %v127_v37 = vadd.f32 %v383_v34, %v126_v35  ;;  %v280_v38 = vadd.f32 %v383_v34, %v279_v36  ;;  %v441_v39 = vpop.f32.mrb[1].mxu1  ;;  %v487_v40 = vpop.f32.mrb[1].mxu0 }
  0xe1   :  { %v130_v41 = vmax.f32 %v127_v37, 0.0  ;;  %v283_v42 = vmax.f32 %v280_v38, 0.0 }
  0xe3   :  { %475 = vmatmul.mubr.f32.vlgmr.msra.gmra.mrb[2].mxu1 %v130_v41  ;;  %521 = vmatmul.mubr.f32.vlgmr.msra.gmra.mrb[2].mxu0 %v283_v42 }
 0x1b6   :  { %v203_v44 = vpop.f32.mrb[2].mxu1  ;;  %v350_v45 = vpop.f32.mrb[2].mxu0 }
 0x1b7   :  { %v204_v46 = vadd.f32 %v385_v43, %v203_v44  ;;  %v351_v47 = vadd.f32 %v385_v43, %v350_v45  ;;  %v476_v48 = vpop.f32.mrb[3].mxu1  ;;  %v522_v49 = vpop.f32.mrb[3].mxu0 }
 0x1b9   :  { %208 = vst.msk [vmem:[#allocation2] sm:$0xff] %vm207_vm2, %v204_v46  ;;  %354 = vst.msk [vmem:[#allocation4] sm:$0xff] %vm207_vm2, %v351_v47 }
 0x1ba   :  { %599 = shalt.err (!%p596_p4)
}
 0x1bb   :  { %s600_s24 = scalar_lea.hbm %s807_s6, 128 }
 0x1bc   :  { %p601_p5 = scmp.ne.s32.totalorder %s807_s6, %s600_s24  ;;  %p604_p6 = scmp.lt.u32.totalorder %s600_s24, %s807_s6 }
 0x1be   :  { %p606_p7 = pnand %p604_p6, %p601_p5 }
 0x1c0   :  { %609 = shalt.err (!%p606_p7)
}
 0x1c1   :  { %364 = dma.vmem_to_hbm [thread:$0]  %s362_s20, 128, %s807_s6, [#allocation3]  }
 0x1c2   :  { %s610_s8 = scalar_lea.vmem %s372_s22, 128  ;;  %p615_p9 = scmp.lt.s32.totalorder %s372_s22, %s372_s22 }
 0x1c3   :  { %p611_p8 = scmp.ne.s32.totalorder %s372_s22, %s610_s8  ;;  %p616_p10 = scmp.lt.s32.totalorder %s610_s8, %s610_s8 }
 0x1c5   :  { %p617_p11 = por %p616_p10, %p615_p9 }
 0x1c7   :  { %p618_p12 = pnand %p617_p11, %p611_p8 }
 0x1c9   :  { %621 = shalt.err (!%p618_p12)
}
 0x1ca   :  { %s622_s11 = scalar_lea.hbm %s808_s7, 128 }
 0x1cb   :  { %p623_p13 = scmp.ne.s32.totalorder %s808_s7, %s622_s11  ;;  %p626_p0 = scmp.lt.u32.totalorder %s622_s11, %s808_s7 }
 0x1cd   :  { %p628_p1 = pnand %p626_p0, %p623_p13 }
 0x1cf   :  { %631 = shalt.err (!%p628_p1)
}
 0x1d0   :  { %374 = dma.vmem_to_hbm [thread:$0]  %s372_s22, 128, %s808_s7, [#allocation5]  }
 0x1d1   :  { %632 = dma.done.wait [#allocation3], 128  }
 0x1d2   :  { %633 = vsyncadd [#allocation3], 4294967168 }
 0x1d3   :  { %634 = dma.done.wait [#allocation5], 128  }
 0x1d4   :  { %635 = vsyncadd [#allocation5], 4294967168 }
 0x1d5   :  { %381 = vsyncpa [#allocation3], 1 }
 0x1d6   :  { %382 = vsyncpa [#allocation5], 1 }

</bundles_post_ra>
